<compile_context>
chip_gen: v7x
topology: tpu7x:2x2x1
jax: 0.10.0
libtpu: 0.0.40
codegen_flags: <defaults>
</compile_context>

<pallas_src>
import jax
import jax.numpy as jnp
from jax.experimental import pallas as pl
from jax.experimental.pallas import tpu as pltpu

EPS = 1e-5
LANE = 128
VMEM_CEILING_BYTES = 48 << 20   # conservative: v7x has 64 MiB physical VMEM


def _round_up(n, m):
    return ((n + m - 1) // m) * m


def dae_kernel(x_ref, w_ref, g_ref, be_ref, out_ref):
    """Fused 6-layer (encoder + decoder) forward.

    x_ref  : [B, x_dim]   f32        un-padded input (full-extent block)
    w_ref  : [L, F, F]    f32/bf16   packed weights (in,out), zero-padded
    g_ref  : [L, 1, F]    f32        BN gamma (0 in pad columns)
    be_ref : [L, 1, F]    f32        BN beta  (0 in pad columns)
    out_ref: [B, x_dim]   f32        un-padded output (full-extent block)
    """
    n_layers, _, F = w_ref.shape
    b, x_dim = x_ref.shape
    inv_b = 1.0 / b                      # static python float
    mxu_dtype = w_ref.dtype

    # Column sums via an MXU ones-row matmul once the batch is large enough
    # that the XLU sublane-reduce chain would sit on the critical path.
    use_mxu_sums = b >= 256
    if use_mxu_sums:
        ones_row = jnp.ones((1, b), jnp.float32)   # hoisted (broadcasts not CSE'd)

    def col_sums(y):
        if use_mxu_sums:
            s1 = jnp.dot(ones_row, y, preferred_element_type=jnp.float32)
            s2 = jnp.dot(ones_row, y * y, preferred_element_type=jnp.float32)
        else:
            s1 = jnp.sum(y, axis=0, keepdims=True)
            s2 = jnp.sum(y * y, axis=0, keepdims=True)
        return s1, s2

    h = x_ref[...].astype(mxu_dtype)     # layer-0 MXU operand
    for l in range(n_layers):            # static unroll: 6 layers
        # Layer 0 contracts over the un-padded x_dim rows of W[0]; the padded
        # rows of W[0] are zero, so this is identical to padding x to F lanes
        # (and avoids a per-call wrapper pad + extra HBM round trip).
        w = w_ref[0, :x_dim, :] if (l == 0 and x_dim != F) else w_ref[l]
        # Linear (bias omitted — exactly cancelled by BN mean subtraction).
        y = jnp.dot(h, w, preferred_element_type=jnp.float32)       # [B, F] f32

        # One-pass batch stats (training-mode BatchNorm1d, biased variance).
        # NOTE: E[y^2]-mean^2 can lose precision when |mean| >> std; post-linear
        # activations here are ~zero-mean, and the max(...,0) guards negatives.
        s1, s2 = col_sums(y)
        mean = s1 * inv_b
        var = jnp.maximum(s2 * inv_b - mean * mean, 0.0)

        # Fold BN affine + normalization into one scale/shift; rsqrt -> EUP.
        # All BN / elementwise math stays f32 (v5e VPU/EUP have no bf16).
        scale = g_ref[l] * jax.lax.rsqrt(var + EPS)                  # [1, F]
        shift = be_ref[l] - mean * scale                             # [1, F]
        act = jnp.maximum(y * scale + shift, 0.0)                    # BN + ReLU
        # Emit next layer's MXU operand directly in bf16: removes a per-layer
        # [B,F] pack pass and halves the live-vreg footprint between layers.
        h = act.astype(mxu_dtype) if l + 1 < n_layers else act

    # Store only the valid columns (masked vst at tiny x_dim is negligible and
    # avoids a separate wrapper-side slice + extra [B, F] HBM round trip).
    out_ref[...] = h[:, :x_dim].astype(out_ref.dtype)


def prepare_params(params, x_dim, mxu_dtype=jnp.bfloat16):
    """ONE-TIME packing of the 6 layers into lane-padded slabs (do at init).

    Re-packing per forward would re-emit ~20 XLA ops and an extra HBM round
    trip of the weight slab on every call — more than the kernel itself.
    """
    ws = [params[f"w{l}"] for l in range(1, 7)]
    gs = [params[f"g{l}"] for l in range(1, 7)]
    bes = [params[f"be{l}"] for l in range(1, 7)]
    n_layers = len(ws)

    dims = [x_dim] + [w.shape[1] for w in ws]
    # Keep F at one lane multiple (128); padding wider to "fill" the 256-wide
    # MXU only adds zero-FLOPs and weight DMA — this op is not MXU-bound.
    F = _round_up(max(dims), LANE)

    W = jnp.zeros((n_layers, F, F), jnp.float32)
    G = jnp.zeros((n_layers, 1, F), jnp.float32)
    BE = jnp.zeros((n_layers, 1, F), jnp.float32)
    for l, (w, g, be) in enumerate(zip(ws, gs, bes)):
        din, dout = w.shape
        W = W.at[l, :din, :dout].set(w)
        G = G.at[l, 0, :dout].set(g)      # pad gamma/beta stay 0 -> pad cols stay 0
        BE = BE.at[l, 0, :dout].set(be)
    # Linear biases dropped on purpose: training-mode BN subtracts the batch
    # mean, exactly cancelling any per-feature bias.  (Not valid for eval-mode
    # BN with running stats — forward-only training parity here.)
    W = W.astype(mxu_dtype)               # bf16 operands: native MXU, half the DMA
    return {"W": W, "G": G, "BE": BE}


@jax.jit
def dae_forward(x, W, G, BE):
    """DenseAutoencoder forward.  x: [B, x_dim] f32 -> [B, x_dim] f32."""
    B, x_dim = x.shape
    n_layers, _, F = W.shape

    itemsize = jnp.dtype(W.dtype).itemsize
    param_bytes = W.size * itemsize + (G.size + BE.size) * 4
    io_bytes = (x.size + B * x_dim) * 4
    act_bytes = 4 * B * F * 4             # h, y, y*y, bf16 copy + headroom
    vmem_needed = param_bytes + io_bytes + act_bytes
    # Whole-batch-resident BN (no grid): the batch must fit VMEM.  v7x only has
    # 64 MiB (≈ half of v5e/v6e), so enforce a conservative ceiling explicitly
    # instead of silently falling over there first.
    if vmem_needed > VMEM_CEILING_BYTES:
        # TODO(synk): batch-tiled grid for large B — weights pinned via constant
        # index_map, 512-1024-row activation tiles, two-phase BN (accumulate
        # s1/s2 over an 'arbitrary' batch axis, then normalize+ReLU).
        raise ValueError(
            f"batch {B} x F={F} needs ~{vmem_needed >> 20} MiB VMEM, above the "
            f"{VMEM_CEILING_BYTES >> 20} MiB whole-batch-resident ceiling")

    cost = pl.CostEstimate(
        flops=2 * n_layers * B * F * F,
        transcendentals=n_layers * F,          # rsqrt per feature per layer
        bytes_accessed=param_bytes + io_bytes,
    )
    return pl.pallas_call(
        dae_kernel,
        out_shape=jax.ShapeDtypeStruct((B, x_dim), jnp.float32),
        in_specs=[pl.BlockSpec(memory_space=pltpu.MemorySpace.VMEM)] * 4,
        out_specs=pl.BlockSpec(memory_space=pltpu.MemorySpace.VMEM),
        compiler_params=pltpu.CompilerParams(
            vmem_limit_bytes=int(min(max(vmem_needed + (2 << 20), 8 << 20),
                                     96 << 20))),
        cost_estimate=cost,
    )(x, W, G, BE)


def init_params(key, x_dim, h_dim1, h_dim2, z_dim):
    """PyTorch-like init for the 6 Linear + BatchNorm1d layers (weights as (in,out))."""
    dims = [x_dim, h_dim1, h_dim2, z_dim, h_dim2, h_dim1, x_dim]  # enc then dec
    keys = jax.random.split(key, 2 * (len(dims) - 1))
    p = {}
    for l in range(len(dims) - 1):
        fan_in, fan_out = dims[l], dims[l + 1]
        bound = 1.0 / (fan_in ** 0.5)
        p[f"w{l+1}"] = jax.random.uniform(keys[2 * l], (fan_in, fan_out),
                                          jnp.float32, -bound, bound)
        p[f"b{l+1}"] = jax.random.uniform(keys[2 * l + 1], (fan_out,),
                                          jnp.float32, -bound, bound)
        p[f"g{l+1}"] = jnp.ones((fan_out,), jnp.float32)    # BN gamma
        p[f"be{l+1}"] = jnp.zeros((fan_out,), jnp.float32)  # BN beta
    return p


def dae_ref(x, p, mxu_dtype=jnp.float32):
    """Faithful pure-JAX reference: Linear(+bias) -> training-mode BN -> ReLU, x6.
    `mxu_dtype` mirrors the kernel's matmul-operand precision for comparison."""
    h = x
    for l in range(1, 7):
        w, b = p[f"w{l}"], p[f"b{l}"]
        g, be = p[f"g{l}"], p[f"be{l}"]
        y = jnp.dot(h.astype(mxu_dtype), w.astype(mxu_dtype),
                    preferred_element_type=jnp.float32) + b
        m = jnp.mean(y, axis=0, keepdims=True)
        v = jnp.mean((y - m) ** 2, axis=0, keepdims=True)      # biased variance
        h = jnp.maximum(g * (y - m) * jax.lax.rsqrt(v + EPS) + be, 0.0)
    return h


if __name__ == "__main__":
    # NOTE: for bf16 operands prefer batches that are multiples of 16 (fills
    # packed (16,128) sublane tiles on the MXU feed path); B=8 kept small here.
    B, x_dim, h_dim1, h_dim2, z_dim = 8, 32, 64, 48, 16

    key = jax.random.PRNGKey(0)
    kx, kp = jax.random.split(key)
    x = jax.random.normal(kx, (B, x_dim), jnp.float32)
    params = init_params(kp, x_dim, h_dim1, h_dim2, z_dim)

    # Strict parity: f32 MXU operands vs faithful PyTorch-style reference (with
    # biases, two-pass BN) — validates that dropping the bias and folding
    # BN+ReLU into one scale/shift is semantics-preserving.
    pk_f32 = prepare_params(params, x_dim, mxu_dtype=jnp.float32)   # one-time pack
    out_f32 = jax.block_until_ready(
        dae_forward(x, pk_f32["W"], pk_f32["G"], pk_f32["BE"]))
    ref_f32 = dae_ref(x, params, mxu_dtype=jnp.float32)
    assert out_f32.shape == (B, x_dim)
    assert jnp.allclose(out_f32, ref_f32, atol=1e-4, rtol=1e-4), "f32 mismatch vs reference"

    # Default fast path: bf16 MXU operands (f32 accumulation / BN math), compared
    # against a reference that uses the same operand precision.
    pk_bf16 = prepare_params(params, x_dim)                         # one-time pack
    out_bf16 = jax.block_until_ready(
        dae_forward(x, pk_bf16["W"], pk_bf16["G"], pk_bf16["BE"]))
    ref_bf16 = dae_ref(x, params, mxu_dtype=jnp.bfloat16)
    assert jnp.allclose(out_bf16, ref_bf16, atol=2e-2, rtol=2e-2), "bf16 mismatch vs reference"

    print("KERNEL_OK")
</pallas_src>

<mosaic_0001>
module attributes {stable_mosaic.version = 11 : i64} {
  func.func @dae_kernel(%arg0: memref<8x32xf32, #tpu.memory_space<vmem>>, %arg1: memref<6x128x128xf32, #tpu.memory_space<vmem>>, %arg2: memref<6x1x128xf32, #tpu.memory_space<vmem>>, %arg3: memref<6x1x128xf32, #tpu.memory_space<vmem>>, %arg4: memref<8x32xf32, #tpu.memory_space<vmem>>) attributes {dimension_semantics = [], scalar_prefetch = 0 : i64, scratch_operands = 0 : i64, tpu.core_type = #tpu.core_type<tc>} {
    %c0 = arith.constant 0 : index
    %c0_0 = arith.constant 0 : index
    %0 = vector.load %arg0[%c0, %c0_0] : memref<8x32xf32, #tpu.memory_space<vmem>>, vector<8x32xf32>
    %c0_1 = arith.constant 0 : index
    %c0_2 = arith.constant 0 : index
    %c0_3 = arith.constant 0 : index
    %1 = vector.load %arg1[%c0_1, %c0_2, %c0_3] : memref<6x128x128xf32, #tpu.memory_space<vmem>>, vector<1x32x128xf32>
    %2 = vector.shape_cast %1 : vector<1x32x128xf32> to vector<32x128xf32>
    %cst = arith.constant dense<0.000000e+00> : vector<8x128xf32>
    %3 = tpu.matmul %0, %2, %cst {dimension_numbers = #tpu.dot_dimension_numbers<[1], [0], [0], [1], [0, 0, 1, 1], [], []>} : vector<8x32xf32>, vector<32x128xf32>, vector<8x128xf32> -> vector<8x128xf32>
    %cst_4 = arith.constant dense<0.000000e+00> : vector<128xf32>
    %4 = vector.multi_reduction <add>, %3, %cst_4 [0] : vector<8x128xf32> to vector<128xf32>
    %5 = vector.shape_cast %4 : vector<128xf32> to vector<1x128xf32>
    %6 = arith.mulf %3, %3 : vector<8x128xf32>
    %cst_5 = arith.constant dense<0.000000e+00> : vector<128xf32>
    %7 = vector.multi_reduction <add>, %6, %cst_5 [0] : vector<8x128xf32> to vector<128xf32>
    %8 = vector.shape_cast %7 : vector<128xf32> to vector<1x128xf32>
    %cst_6 = arith.constant 1.250000e-01 : f32
    %9 = vector.broadcast %cst_6 : f32 to vector<1x128xf32>
    %10 = arith.mulf %5, %9 : vector<1x128xf32>
    %cst_7 = arith.constant 1.250000e-01 : f32
    %11 = vector.broadcast %cst_7 : f32 to vector<1x128xf32>
    %12 = arith.mulf %8, %11 : vector<1x128xf32>
    %13 = arith.mulf %10, %10 : vector<1x128xf32>
    %14 = arith.subf %12, %13 : vector<1x128xf32>
    %cst_8 = arith.constant 0.000000e+00 : f32
    %15 = vector.broadcast %cst_8 : f32 to vector<1x128xf32>
    %16 = arith.maximumf %14, %15 : vector<1x128xf32>
    %c0_9 = arith.constant 0 : index
    %c0_10 = arith.constant 0 : index
    %c0_11 = arith.constant 0 : index
    %17 = vector.load %arg2[%c0_9, %c0_10, %c0_11] : memref<6x1x128xf32, #tpu.memory_space<vmem>>, vector<1x1x128xf32>
    %18 = vector.shape_cast %17 : vector<1x1x128xf32> to vector<1x128xf32>
    %cst_12 = arith.constant 9.99999974E-6 : f32
    %19 = vector.broadcast %cst_12 : f32 to vector<1x128xf32>
    %20 = arith.addf %16, %19 : vector<1x128xf32>
    %21 = math.rsqrt %20 : vector<1x128xf32>
    %22 = arith.mulf %18, %21 : vector<1x128xf32>
    %c0_13 = arith.constant 0 : index
    %c0_14 = arith.constant 0 : index
    %c0_15 = arith.constant 0 : index
    %23 = vector.load %arg3[%c0_13, %c0_14, %c0_15] : memref<6x1x128xf32, #tpu.memory_space<vmem>>, vector<1x1x128xf32>
    %24 = vector.shape_cast %23 : vector<1x1x128xf32> to vector<1x128xf32>
    %25 = arith.mulf %10, %22 : vector<1x128xf32>
    %26 = arith.subf %24, %25 : vector<1x128xf32>
    %27 = vector.broadcast %22 : vector<1x128xf32> to vector<8x128xf32>
    %28 = arith.mulf %3, %27 : vector<8x128xf32>
    %29 = vector.broadcast %26 : vector<1x128xf32> to vector<8x128xf32>
    %30 = arith.addf %28, %29 : vector<8x128xf32>
    %cst_16 = arith.constant 0.000000e+00 : f32
    %31 = vector.broadcast %cst_16 : f32 to vector<8x128xf32>
    %32 = arith.maximumf %30, %31 : vector<8x128xf32>
    %c1 = arith.constant 1 : index
    %c0_17 = arith.constant 0 : index
    %c0_18 = arith.constant 0 : index
    %33 = vector.load %arg1[%c1, %c0_17, %c0_18] : memref<6x128x128xf32, #tpu.memory_space<vmem>>, vector<1x128x128xf32>
    %34 = vector.shape_cast %33 : vector<1x128x128xf32> to vector<128x128xf32>
    %cst_19 = arith.constant dense<0.000000e+00> : vector<8x128xf32>
    %35 = tpu.matmul %32, %34, %cst_19 {dimension_numbers = #tpu.dot_dimension_numbers<[1], [0], [0], [1], [0, 0, 1, 1], [], []>} : vector<8x128xf32>, vector<128x128xf32>, vector<8x128xf32> -> vector<8x128xf32>
    %cst_20 = arith.constant dense<0.000000e+00> : vector<128xf32>
    %36 = vector.multi_reduction <add>, %35, %cst_20 [0] : vector<8x128xf32> to vector<128xf32>
    %37 = vector.shape_cast %36 : vector<128xf32> to vector<1x128xf32>
    %38 = arith.mulf %35, %35 : vector<8x128xf32>
    %cst_21 = arith.constant dense<0.000000e+00> : vector<128xf32>
    %39 = vector.multi_reduction <add>, %38, %cst_21 [0] : vector<8x128xf32> to vector<128xf32>
    %40 = vector.shape_cast %39 : vector<128xf32> to vector<1x128xf32>
    %cst_22 = arith.constant 1.250000e-01 : f32
    %41 = vector.broadcast %cst_22 : f32 to vector<1x128xf32>
    %42 = arith.mulf %37, %41 : vector<1x128xf32>
    %cst_23 = arith.constant 1.250000e-01 : f32
    %43 = vector.broadcast %cst_23 : f32 to vector<1x128xf32>
    %44 = arith.mulf %40, %43 : vector<1x128xf32>
    %45 = arith.mulf %42, %42 : vector<1x128xf32>
    %46 = arith.subf %44, %45 : vector<1x128xf32>
    %cst_24 = arith.constant 0.000000e+00 : f32
    %47 = vector.broadcast %cst_24 : f32 to vector<1x128xf32>
    %48 = arith.maximumf %46, %47 : vector<1x128xf32>
    %c1_25 = arith.constant 1 : index
    %c0_26 = arith.constant 0 : index
    %c0_27 = arith.constant 0 : index
    %49 = vector.load %arg2[%c1_25, %c0_26, %c0_27] : memref<6x1x128xf32, #tpu.memory_space<vmem>>, vector<1x1x128xf32>
    %50 = vector.shape_cast %49 : vector<1x1x128xf32> to vector<1x128xf32>
    %cst_28 = arith.constant 9.99999974E-6 : f32
    %51 = vector.broadcast %cst_28 : f32 to vector<1x128xf32>
    %52 = arith.addf %48, %51 : vector<1x128xf32>
    %53 = math.rsqrt %52 : vector<1x128xf32>
    %54 = arith.mulf %50, %53 : vector<1x128xf32>
    %c1_29 = arith.constant 1 : index
    %c0_30 = arith.constant 0 : index
    %c0_31 = arith.constant 0 : index
    %55 = vector.load %arg3[%c1_29, %c0_30, %c0_31] : memref<6x1x128xf32, #tpu.memory_space<vmem>>, vector<1x1x128xf32>
    %56 = vector.shape_cast %55 : vector<1x1x128xf32> to vector<1x128xf32>
    %57 = arith.mulf %42, %54 : vector<1x128xf32>
    %58 = arith.subf %56, %57 : vector<1x128xf32>
    %59 = vector.broadcast %54 : vector<1x128xf32> to vector<8x128xf32>
    %60 = arith.mulf %35, %59 : vector<8x128xf32>
    %61 = vector.broadcast %58 : vector<1x128xf32> to vector<8x128xf32>
    %62 = arith.addf %60, %61 : vector<8x128xf32>
    %cst_32 = arith.constant 0.000000e+00 : f32
    %63 = vector.broadcast %cst_32 : f32 to vector<8x128xf32>
    %64 = arith.maximumf %62, %63 : vector<8x128xf32>
    %c2 = arith.constant 2 : index
    %c0_33 = arith.constant 0 : index
    %c0_34 = arith.constant 0 : index
    %65 = vector.load %arg1[%c2, %c0_33, %c0_34] : memref<6x128x128xf32, #tpu.memory_space<vmem>>, vector<1x128x128xf32>
    %66 = vector.shape_cast %65 : vector<1x128x128xf32> to vector<128x128xf32>
    %cst_35 = arith.constant dense<0.000000e+00> : vector<8x128xf32>
    %67 = tpu.matmul %64, %66, %cst_35 {dimension_numbers = #tpu.dot_dimension_numbers<[1], [0], [0], [1], [0, 0, 1, 1], [], []>} : vector<8x128xf32>, vector<128x128xf32>, vector<8x128xf32> -> vector<8x128xf32>
    %cst_36 = arith.constant dense<0.000000e+00> : vector<128xf32>
    %68 = vector.multi_reduction <add>, %67, %cst_36 [0] : vector<8x128xf32> to vector<128xf32>
    %69 = vector.shape_cast %68 : vector<128xf32> to vector<1x128xf32>
    %70 = arith.mulf %67, %67 : vector<8x128xf32>
    %cst_37 = arith.constant dense<0.000000e+00> : vector<128xf32>
    %71 = vector.multi_reduction <add>, %70, %cst_37 [0] : vector<8x128xf32> to vector<128xf32>
    %72 = vector.shape_cast %71 : vector<128xf32> to vector<1x128xf32>
    %cst_38 = arith.constant 1.250000e-01 : f32
    %73 = vector.broadcast %cst_38 : f32 to vector<1x128xf32>
    %74 = arith.mulf %69, %73 : vector<1x128xf32>
    %cst_39 = arith.constant 1.250000e-01 : f32
    %75 = vector.broadcast %cst_39 : f32 to vector<1x128xf32>
    %76 = arith.mulf %72, %75 : vector<1x128xf32>
    %77 = arith.mulf %74, %74 : vector<1x128xf32>
    %78 = arith.subf %76, %77 : vector<1x128xf32>
    %cst_40 = arith.constant 0.000000e+00 : f32
    %79 = vector.broadcast %cst_40 : f32 to vector<1x128xf32>
    %80 = arith.maximumf %78, %79 : vector<1x128xf32>
    %c2_41 = arith.constant 2 : index
    %c0_42 = arith.constant 0 : index
    %c0_43 = arith.constant 0 : index
    %81 = vector.load %arg2[%c2_41, %c0_42, %c0_43] : memref<6x1x128xf32, #tpu.memory_space<vmem>>, vector<1x1x128xf32>
    %82 = vector.shape_cast %81 : vector<1x1x128xf32> to vector<1x128xf32>
    %cst_44 = arith.constant 9.99999974E-6 : f32
    %83 = vector.broadcast %cst_44 : f32 to vector<1x128xf32>
    %84 = arith.addf %80, %83 : vector<1x128xf32>
    %85 = math.rsqrt %84 : vector<1x128xf32>
    %86 = arith.mulf %82, %85 : vector<1x128xf32>
    %c2_45 = arith.constant 2 : index
    %c0_46 = arith.constant 0 : index
    %c0_47 = arith.constant 0 : index
    %87 = vector.load %arg3[%c2_45, %c0_46, %c0_47] : memref<6x1x128xf32, #tpu.memory_space<vmem>>, vector<1x1x128xf32>
    %88 = vector.shape_cast %87 : vector<1x1x128xf32> to vector<1x128xf32>
    %89 = arith.mulf %74, %86 : vector<1x128xf32>
    %90 = arith.subf %88, %89 : vector<1x128xf32>
    %91 = vector.broadcast %86 : vector<1x128xf32> to vector<8x128xf32>
    %92 = arith.mulf %67, %91 : vector<8x128xf32>
    %93 = vector.broadcast %90 : vector<1x128xf32> to vector<8x128xf32>
    %94 = arith.addf %92, %93 : vector<8x128xf32>
    %cst_48 = arith.constant 0.000000e+00 : f32
    %95 = vector.broadcast %cst_48 : f32 to vector<8x128xf32>
    %96 = arith.maximumf %94, %95 : vector<8x128xf32>
    %c3 = arith.constant 3 : index
    %c0_49 = arith.constant 0 : index
    %c0_50 = arith.constant 0 : index
    %97 = vector.load %arg1[%c3, %c0_49, %c0_50] : memref<6x128x128xf32, #tpu.memory_space<vmem>>, vector<1x128x128xf32>
    %98 = vector.shape_cast %97 : vector<1x128x128xf32> to vector<128x128xf32>
    %cst_51 = arith.constant dense<0.000000e+00> : vector<8x128xf32>
    %99 = tpu.matmul %96, %98, %cst_51 {dimension_numbers = #tpu.dot_dimension_numbers<[1], [0], [0], [1], [0, 0, 1, 1], [], []>} : vector<8x128xf32>, vector<128x128xf32>, vector<8x128xf32> -> vector<8x128xf32>
    %cst_52 = arith.constant dense<0.000000e+00> : vector<128xf32>
    %100 = vector.multi_reduction <add>, %99, %cst_52 [0] : vector<8x128xf32> to vector<128xf32>
    %101 = vector.shape_cast %100 : vector<128xf32> to vector<1x128xf32>
    %102 = arith.mulf %99, %99 : vector<8x128xf32>
    %cst_53 = arith.constant dense<0.000000e+00> : vector<128xf32>
    %103 = vector.multi_reduction <add>, %102, %cst_53 [0] : vector<8x128xf32> to vector<128xf32>
    %104 = vector.shape_cast %103 : vector<128xf32> to vector<1x128xf32>
    %cst_54 = arith.constant 1.250000e-01 : f32
    %105 = vector.broadcast %cst_54 : f32 to vector<1x128xf32>
    %106 = arith.mulf %101, %105 : vector<1x128xf32>
    %cst_55 = arith.constant 1.250000e-01 : f32
    %107 = vector.broadcast %cst_55 : f32 to vector<1x128xf32>
    %108 = arith.mulf %104, %107 : vector<1x128xf32>
    %109 = arith.mulf %106, %106 : vector<1x128xf32>
    %110 = arith.subf %108, %109 : vector<1x128xf32>
    %cst_56 = arith.constant 0.000000e+00 : f32
    %111 = vector.broadcast %cst_56 : f32 to vector<1x128xf32>
    %112 = arith.maximumf %110, %111 : vector<1x128xf32>
    %c3_57 = arith.constant 3 : index
    %c0_58 = arith.constant 0 : index
    %c0_59 = arith.constant 0 : index
    %113 = vector.load %arg2[%c3_57, %c0_58, %c0_59] : memref<6x1x128xf32, #tpu.memory_space<vmem>>, vector<1x1x128xf32>
    %114 = vector.shape_cast %113 : vector<1x1x128xf32> to vector<1x128xf32>
    %cst_60 = arith.constant 9.99999974E-6 : f32
    %115 = vector.broadcast %cst_60 : f32 to vector<1x128xf32>
    %116 = arith.addf %112, %115 : vector<1x128xf32>
    %117 = math.rsqrt %116 : vector<1x128xf32>
    %118 = arith.mulf %114, %117 : vector<1x128xf32>
    %c3_61 = arith.constant 3 : index
    %c0_62 = arith.constant 0 : index
    %c0_63 = arith.constant 0 : index
    %119 = vector.load %arg3[%c3_61, %c0_62, %c0_63] : memref<6x1x128xf32, #tpu.memory_space<vmem>>, vector<1x1x128xf32>
    %120 = vector.shape_cast %119 : vector<1x1x128xf32> to vector<1x128xf32>
    %121 = arith.mulf %106, %118 : vector<1x128xf32>
    %122 = arith.subf %120, %121 : vector<1x128xf32>
    %123 = vector.broadcast %118 : vector<1x128xf32> to vector<8x128xf32>
    %124 = arith.mulf %99, %123 : vector<8x128xf32>
    %125 = vector.broadcast %122 : vector<1x128xf32> to vector<8x128xf32>
    %126 = arith.addf %124, %125 : vector<8x128xf32>
    %cst_64 = arith.constant 0.000000e+00 : f32
    %127 = vector.broadcast %cst_64 : f32 to vector<8x128xf32>
    %128 = arith.maximumf %126, %127 : vector<8x128xf32>
    %c4 = arith.constant 4 : index
    %c0_65 = arith.constant 0 : index
    %c0_66 = arith.constant 0 : index
    %129 = vector.load %arg1[%c4, %c0_65, %c0_66] : memref<6x128x128xf32, #tpu.memory_space<vmem>>, vector<1x128x128xf32>
    %130 = vector.shape_cast %129 : vector<1x128x128xf32> to vector<128x128xf32>
    %cst_67 = arith.constant dense<0.000000e+00> : vector<8x128xf32>
    %131 = tpu.matmul %128, %130, %cst_67 {dimension_numbers = #tpu.dot_dimension_numbers<[1], [0], [0], [1], [0, 0, 1, 1], [], []>} : vector<8x128xf32>, vector<128x128xf32>, vector<8x128xf32> -> vector<8x128xf32>
    %cst_68 = arith.constant dense<0.000000e+00> : vector<128xf32>
    %132 = vector.multi_reduction <add>, %131, %cst_68 [0] : vector<8x128xf32> to vector<128xf32>
    %133 = vector.shape_cast %132 : vector<128xf32> to vector<1x128xf32>
    %134 = arith.mulf %131, %131 : vector<8x128xf32>
    %cst_69 = arith.constant dense<0.000000e+00> : vector<128xf32>
    %135 = vector.multi_reduction <add>, %134, %cst_69 [0] : vector<8x128xf32> to vector<128xf32>
    %136 = vector.shape_cast %135 : vector<128xf32> to vector<1x128xf32>
    %cst_70 = arith.constant 1.250000e-01 : f32
    %137 = vector.broadcast %cst_70 : f32 to vector<1x128xf32>
    %138 = arith.mulf %133, %137 : vector<1x128xf32>
    %cst_71 = arith.constant 1.250000e-01 : f32
    %139 = vector.broadcast %cst_71 : f32 to vector<1x128xf32>
    %140 = arith.mulf %136, %139 : vector<1x128xf32>
    %141 = arith.mulf %138, %138 : vector<1x128xf32>
    %142 = arith.subf %140, %141 : vector<1x128xf32>
    %cst_72 = arith.constant 0.000000e+00 : f32
    %143 = vector.broadcast %cst_72 : f32 to vector<1x128xf32>
    %144 = arith.maximumf %142, %143 : vector<1x128xf32>
    %c4_73 = arith.constant 4 : index
    %c0_74 = arith.constant 0 : index
    %c0_75 = arith.constant 0 : index
    %145 = vector.load %arg2[%c4_73, %c0_74, %c0_75] : memref<6x1x128xf32, #tpu.memory_space<vmem>>, vector<1x1x128xf32>
    %146 = vector.shape_cast %145 : vector<1x1x128xf32> to vector<1x128xf32>
    %cst_76 = arith.constant 9.99999974E-6 : f32
    %147 = vector.broadcast %cst_76 : f32 to vector<1x128xf32>
    %148 = arith.addf %144, %147 : vector<1x128xf32>
    %149 = math.rsqrt %148 : vector<1x128xf32>
    %150 = arith.mulf %146, %149 : vector<1x128xf32>
    %c4_77 = arith.constant 4 : index
    %c0_78 = arith.constant 0 : index
    %c0_79 = arith.constant 0 : index
    %151 = vector.load %arg3[%c4_77, %c0_78, %c0_79] : memref<6x1x128xf32, #tpu.memory_space<vmem>>, vector<1x1x128xf32>
    %152 = vector.shape_cast %151 : vector<1x1x128xf32> to vector<1x128xf32>
    %153 = arith.mulf %138, %150 : vector<1x128xf32>
    %154 = arith.subf %152, %153 : vector<1x128xf32>
    %155 = vector.broadcast %150 : vector<1x128xf32> to vector<8x128xf32>
    %156 = arith.mulf %131, %155 : vector<8x128xf32>
    %157 = vector.broadcast %154 : vector<1x128xf32> to vector<8x128xf32>
    %158 = arith.addf %156, %157 : vector<8x128xf32>
    %cst_80 = arith.constant 0.000000e+00 : f32
    %159 = vector.broadcast %cst_80 : f32 to vector<8x128xf32>
    %160 = arith.maximumf %158, %159 : vector<8x128xf32>
    %c5 = arith.constant 5 : index
    %c0_81 = arith.constant 0 : index
    %c0_82 = arith.constant 0 : index
    %161 = vector.load %arg1[%c5, %c0_81, %c0_82] : memref<6x128x128xf32, #tpu.memory_space<vmem>>, vector<1x128x128xf32>
    %162 = vector.shape_cast %161 : vector<1x128x128xf32> to vector<128x128xf32>
    %cst_83 = arith.constant dense<0.000000e+00> : vector<8x128xf32>
    %163 = tpu.matmul %160, %162, %cst_83 {dimension_numbers = #tpu.dot_dimension_numbers<[1], [0], [0], [1], [0, 0, 1, 1], [], []>} : vector<8x128xf32>, vector<128x128xf32>, vector<8x128xf32> -> vector<8x128xf32>
    %cst_84 = arith.constant dense<0.000000e+00> : vector<128xf32>
    %164 = vector.multi_reduction <add>, %163, %cst_84 [0] : vector<8x128xf32> to vector<128xf32>
    %165 = vector.shape_cast %164 : vector<128xf32> to vector<1x128xf32>
    %166 = arith.mulf %163, %163 : vector<8x128xf32>
    %cst_85 = arith.constant dense<0.000000e+00> : vector<128xf32>
    %167 = vector.multi_reduction <add>, %166, %cst_85 [0] : vector<8x128xf32> to vector<128xf32>
    %168 = vector.shape_cast %167 : vector<128xf32> to vector<1x128xf32>
    %cst_86 = arith.constant 1.250000e-01 : f32
    %169 = vector.broadcast %cst_86 : f32 to vector<1x128xf32>
    %170 = arith.mulf %165, %169 : vector<1x128xf32>
    %cst_87 = arith.constant 1.250000e-01 : f32
    %171 = vector.broadcast %cst_87 : f32 to vector<1x128xf32>
    %172 = arith.mulf %168, %171 : vector<1x128xf32>
    %173 = arith.mulf %170, %170 : vector<1x128xf32>
    %174 = arith.subf %172, %173 : vector<1x128xf32>
    %cst_88 = arith.constant 0.000000e+00 : f32
    %175 = vector.broadcast %cst_88 : f32 to vector<1x128xf32>
    %176 = arith.maximumf %174, %175 : vector<1x128xf32>
    %c5_89 = arith.constant 5 : index
    %c0_90 = arith.constant 0 : index
    %c0_91 = arith.constant 0 : index
    %177 = vector.load %arg2[%c5_89, %c0_90, %c0_91] : memref<6x1x128xf32, #tpu.memory_space<vmem>>, vector<1x1x128xf32>
    %178 = vector.shape_cast %177 : vector<1x1x128xf32> to vector<1x128xf32>
    %cst_92 = arith.constant 9.99999974E-6 : f32
    %179 = vector.broadcast %cst_92 : f32 to vector<1x128xf32>
    %180 = arith.addf %176, %179 : vector<1x128xf32>
    %181 = math.rsqrt %180 : vector<1x128xf32>
    %182 = arith.mulf %178, %181 : vector<1x128xf32>
    %c5_93 = arith.constant 5 : index
    %c0_94 = arith.constant 0 : index
    %c0_95 = arith.constant 0 : index
    %183 = vector.load %arg3[%c5_93, %c0_94, %c0_95] : memref<6x1x128xf32, #tpu.memory_space<vmem>>, vector<1x1x128xf32>
    %184 = vector.shape_cast %183 : vector<1x1x128xf32> to vector<1x128xf32>
    %185 = arith.mulf %170, %182 : vector<1x128xf32>
    %186 = arith.subf %184, %185 : vector<1x128xf32>
    %187 = vector.broadcast %182 : vector<1x128xf32> to vector<8x128xf32>
    %188 = arith.mulf %163, %187 : vector<8x128xf32>
    %189 = vector.broadcast %186 : vector<1x128xf32> to vector<8x128xf32>
    %190 = arith.addf %188, %189 : vector<8x128xf32>
    %cst_96 = arith.constant 0.000000e+00 : f32
    %191 = vector.broadcast %cst_96 : f32 to vector<8x128xf32>
    %192 = arith.maximumf %190, %191 : vector<8x128xf32>
    %193 = vector.extract_strided_slice %192 {offsets = [0, 0], sizes = [8, 32], strides = [1, 1]} : vector<8x128xf32> to vector<8x32xf32>
    %c0_97 = arith.constant 0 : index
    %c0_98 = arith.constant 0 : index
    %194 = vector.load %arg4[%c0_97, %c0_98] : memref<8x32xf32, #tpu.memory_space<vmem>>, vector<8x32xf32>
    tpu.vector_store %arg4[%c0_97, %c0_98], %193 {strides = array<i32>} : memref<8x32xf32, #tpu.memory_space<vmem>>, vector<8x32xf32>,
    return
  }
}

</mosaic_0001>

<bundles_post_ra>
// kernel: dae_forward.1
= control target key start
LH: loop header
LB: loop body
LE: loop exit
PB: predicated region body
PF: predicated region fallthrough
CT: control target
= control target key end

     0   :  { %9 = vsyncpa [#allocation3], 0  ;;  %s1535_s0 = inlined_call_operand.hbm [shape: f32[8,32], index: 0, kind: input, shape index: {}]   ;;  %s1536_s1 = inlined_call_operand.hbm [shape: f32[6,128,128], index: 1, kind: input, shape index: {}]   ;;  %s1537_s2 = inlined_call_operand.vmem [shape: f32[6,1,128], index: 2, kind: input, shape index: {}]   ;;  %s1538_s3 = inlined_call_operand.hbm [shape: f32[6,1,128], index: 3, kind: input, shape index: {}]   ;;  %s1539_s4 = inlined_call_operand.hbm [shape: f32[8,32], index: 4, kind: output, shape index: {}]  }
   0x1   :  { %10 = vsyncpa [#allocation6], 0 }
   0x2   :  { %11 = vsyncpa [#allocation4], 0  ;;  %s1363_s15 = smov [#allocation5]   ;;  %s1269_s19 = scalar_lea.hbm %s1536_s1, 12288 }
   0x3   :  { %s27_s16 = sshll.u32 %s1363_s15, 4  ;;  %p1270_p0 = scmp.ne.s32.totalorder %s1536_s1, %s1269_s19  ;;  %s28_s16 = int_to_ptr.vmem [resolvable:$true] %s27_s16 }
   0x4   :  { %p1273_p1 = scmp.lt.u32.totalorder %s1269_s19, %s1536_s1 }
   0x6   :  { %p1275_p2 = pnand %p1273_p1, %p1270_p0 }
   0x8   :  { %1278 = shalt.err (!%p1275_p2)
}
   0x9   :  { %s1279_s24 = scalar_lea.vmem %s28_s16, 12288  ;;  %p1284_p4 = scmp.lt.s32.totalorder %s28_s16, %s28_s16 }
   0xa   :  { %p1280_p3 = scmp.ne.s32.totalorder %s28_s16, %s1279_s24  ;;  %p1285_p5 = scmp.lt.s32.totalorder %s1279_s24, %s1279_s24 }
   0xc   :  { %p1286_p6 = por %p1285_p5, %p1284_p4 }
   0xe   :  { %p1287_p7 = pnand %p1286_p6, %p1280_p3 }
  0x10   :  { %1290 = shalt.err (!%p1287_p7)
}
  0x11   :  { %s1364_s25 = smov 128   ;;  %s1365_s26 = smov 8  }
  0x12   :  { %33 = dma.hbm_to_vmem [thread:$0]  %s1536_s1, 12288, %s28_s16, [#allocation6], %s1364_s25, %s1364_s25, %s1365_s26  }
  0x13   :  { %s1366_s29 = smov [#allocation2]   ;;  %s1367_s5 = smov [#allocation7]  }
  0x14   :  { %s18_s30 = sshll.u32 %s1366_s29, 4  ;;  %s41_s6 = sshll.u32 %s1367_s5, 4  ;;  %s19_s30 = int_to_ptr.vmem [resolvable:$true] %s18_s30  ;;  %s42_s6 = int_to_ptr.vmem [resolvable:$true] %s41_s6 }
  0x15   :  { %s1291_s9 = scalar_lea.hbm %s1535_s0, 128 }
  0x16   :  { %p1292_p8 = scmp.ne.s32.totalorder %s1535_s0, %s1291_s9  ;;  %p1295_p9 = scmp.lt.u32.totalorder %s1291_s9, %s1535_s0 }
  0x18   :  { %p1297_p10 = pnand %p1295_p9, %p1292_p8 }
  0x1a   :  { %1300 = shalt.err (!%p1297_p10)
}
  0x1b   :  { %s1301_s1 = scalar_lea.vmem %s19_s30, 128  ;;  %p1306_p12 = scmp.lt.s32.totalorder %s19_s30, %s19_s30 }
  0x1c   :  { %p1302_p11 = scmp.ne.s32.totalorder %s19_s30, %s1301_s1  ;;  %p1307_p13 = scmp.lt.s32.totalorder %s1301_s1, %s1301_s1 }
  0x1e   :  { %p1308_p0 = por %p1307_p13, %p1306_p12 }
  0x20   :  { %p1309_p1 = pnand %p1308_p0, %p1302_p11 }
  0x22   :  { %1312 = shalt.err (!%p1309_p1)
}
  0x23   :  { %21 = dma.hbm_to_vmem [thread:$0]  %s1535_s0, 128, %s19_s30, [#allocation3]  }
  0x24   :  { %s1313_s18 = scalar_lea.hbm %s1538_s3, 96 }
  0x25   :  { %p1314_p2 = scmp.ne.s32.totalorder %s1538_s3, %s1313_s18  ;;  %p1317_p3 = scmp.lt.u32.totalorder %s1313_s18, %s1538_s3 }
  0x27   :  { %p1319_p4 = pnand %p1317_p3, %p1314_p2 }
  0x29   :  { %1322 = shalt.err (!%p1319_p4)
}
  0x2a   :  { %s1323_s23 = scalar_lea.vmem %s42_s6, 96  ;;  %p1328_p6 = scmp.lt.s32.totalorder %s42_s6, %s42_s6 }
  0x2b   :  { %p1324_p5 = scmp.ne.s32.totalorder %s42_s6, %s1323_s23  ;;  %p1329_p7 = scmp.lt.s32.totalorder %s1323_s23, %s1323_s23 }
  0x2d   :  { %p1330_p8 = por %p1329_p7, %p1328_p6 }
  0x2f   :  { %p1331_p9 = pnand %p1330_p8, %p1324_p5 }
  0x31   :  { %1334 = shalt.err (!%p1331_p9)
}
  0x32   :  { %s1368_s0 = smov 16   ;;  %s1369_s24 = smov 1  }
  0x33   :  { %47 = dma.hbm_to_vmem [thread:$0]  %s1538_s3, 96, %s42_s6, [#allocation6], %s1368_s0, %s1368_s0, %s1369_s24  }
  0x34   :  { %1357 = dma.done.wait [#allocation3], 128  }
  0x35   :  { %1358 = vsyncadd [#allocation3], 4294967168 }
  0x36   :  { %1359 = dma.done.wait [#allocation6], 12384  }
  0x37   :  { %1360 = vsyncadd [#allocation6], 4294954912  ;;  %v1370_v0 = vmov 0.0|0.0   ;;  %vm1371_vm0 = vmmov 0   ;;  %v1372_v1 = vmov 0.0   ;;  %v58_v2 = vld [vmem:[#allocation5] sm:$0xff]  ;;  %v162_v54 = vlaneseq }
  0x38   :  { %1120 = vmatprep.subr.bf16.mxu0 %v1370_v0  ;;  %942 = vmatprep.mubr.msk.f32.mxu0 %vm1371_vm0, %v1372_v1  ;;  %v59_v3 = vld [vmem:[#allocation5 + $0x8] sm:$0xff]  ;;  %v60_v4 = vld [vmem:[#allocation5 + $0x10] sm:$0xff]  ;;  %v61_v6 = vld [vmem:[#allocation5 + $0x18] sm:$0xff]  ;;  %vm62_vm1 = vcmask 261120   ;;  %s1373_s12 = smov [#allocation8]  }
  0x39   :  { %1126 = vmatprep.subr.bf16.mxu1 %v1370_v0  ;;  %977 = vmatprep.mubr.msk.f32.mxu1 %vm1371_vm0, %v1372_v1  ;;  %v1121_v5 = vpack.c.bf16 %v59_v3, %v58_v2  ;;  %v1124_v7 = vpack.c.bf16 %v61_v6, %v60_v4  ;;  %v57_v8 = vld [vmem:[#allocation2] sm:$0xff]  ;;  %v177_v9 = vld [vmem:[#allocation5 + $0x80] sm:$0xff]  ;;  %v178_v10 = vld [vmem:[#allocation5 + $0x88] sm:$0xff]  ;;  %v163_v55 = vshrl.u32 %v162_v54, 7  ;;  %s828_s13 = sshll.u32 %s1373_s12, 4  ;;  %s829_s13 = int_to_ptr.vmem [resolvable:$true] %s828_s13 }
  0x3a   :  { %v1127_v11 = vpack.c.bf16 %v178_v10, %v177_v9  ;;  %v179_v12 = vld [vmem:[#allocation5 + $0x90] sm:$0xff]  ;;  %v180_v13 = vld [vmem:[#allocation5 + $0x98] sm:$0xff]  ;;  %v181_v15 = vld [vmem:[#allocation5 + $0xa0] sm:$0xff]  ;;  %s1335_s1 = scalar_lea.vmem %s829_s13, 128  ;;  %p1340_p11 = scmp.lt.s32.totalorder %s829_s13, %s829_s13 }
  0x3b   :  { %1122 = vmatpush3.bf16.msra.mxu0 %v1121_v5  ;;  %v1130_v14 = vpack.c.bf16 %v180_v13, %v179_v12  ;;  %v182_v16 = vld [vmem:[#allocation5 + $0xa8] sm:$0xff]  ;;  %v183_v18 = vld [vmem:[#allocation5 + $0xb0] sm:$0xff]  ;;  %v184_v19 = vld [vmem:[#allocation5 + $0xb8] sm:$0xff]  ;;  %v1457_v57 = vsub.s32 0, %v163_v55  ;;  %p1336_p10 = scmp.ne.s32.totalorder %s829_s13, %s1335_s1  ;;  %p1341_p12 = scmp.lt.s32.totalorder %s1335_s1, %s1335_s1 }
  0x3c   :  { %1123 = vmatprep.subr.bf16.mxu0 %v1370_v0  ;;  %1128 = vmatpush3.bf16.msra.mxu1 %v1127_v11  ;;  %v1133_v17 = vpack.c.bf16 %v182_v16, %v181_v15  ;;  %v1136_v20 = vpack.c.bf16 %v184_v19, %v183_v18  ;;  %v185_v21 = vld [vmem:[#allocation5 + $0xc0] sm:$0xff]  ;;  %v186_v22 = vld [vmem:[#allocation5 + $0xc8] sm:$0xff]  ;;  %v187_v24 = vld [vmem:[#allocation5 + $0xd0] sm:$0xff] }
  0x3d   :  { %1129 = vmatprep.subr.bf16.mxu1 %v1370_v0  ;;  %v1139_v23 = vpack.c.bf16 %v186_v22, %v185_v21  ;;  %v188_v25 = vld [vmem:[#allocation5 + $0xd8] sm:$0xff]  ;;  %v189_v27 = vld [vmem:[#allocation5 + $0xe0] sm:$0xff]  ;;  %v190_v28 = vld [vmem:[#allocation5 + $0xe8] sm:$0xff]  ;;  %p1342_p13 = por %p1341_p12, %p1340_p11 }
  0x3e   :  { %v1142_v26 = vpack.c.bf16 %v188_v25, %v187_v24  ;;  %v1145_v29 = vpack.c.bf16 %v190_v28, %v189_v27  ;;  %v191_v30 = vld [vmem:[#allocation5 + $0xf0] sm:$0xff]  ;;  %v192_v31 = vld [vmem:[#allocation5 + $0xf8] sm:$0xff]  ;;  %v158_v60 = vld [vmem:[#allocation7] sm:$0x1] }
  0x3f   :  { %1125 = vmatpush3.bf16.msra.mxu0 %v1124_v7  ;;  %v1148_v32 = vpack.c.bf16 %v192_v31, %v191_v30  ;;  %v154_v56 = vld [vmem:[%s1537_s2] sm:$0x1]  ;;  %v306_v6 = vld [vmem:[#allocation5 + $0x100] sm:$0xff]  ;;  %v307_v7 = vld [vmem:[#allocation5 + $0x108] sm:$0xff]  ;;  %p1343_p0 = pnand %p1342_p13, %p1336_p10 }
  0x40   :  { %1150 = vmatprep.subr.bf16.mxu0 %v1370_v0  ;;  %1131 = vmatpush3.bf16.msra.mxu1 %v1130_v14  ;;  %v308_v9 = vld [vmem:[#allocation5 + $0x110] sm:$0xff]  ;;  %v309_v10 = vld [vmem:[#allocation5 + $0x118] sm:$0xff]  ;;  %v310_v12 = vld [vmem:[#allocation5 + $0x120] sm:$0xff] }
  0x41   :  { %1132 = vmatprep.subr.bf16.mxu1 %v1370_v0  ;;  %v1154_v11 = vpack.c.bf16 %v309_v10, %v308_v9  ;;  %v311_v13 = vld [vmem:[#allocation5 + $0x128] sm:$0xff]  ;;  %v312_v15 = vld [vmem:[#allocation5 + $0x130] sm:$0xff]  ;;  %v313_v16 = vld [vmem:[#allocation5 + $0x138] sm:$0xff] }
  0x42   :  { %943 = vmatmul.mubr.msk.f32.vlgmr.msra.gmra.mrb[0].mxu0 %vm62_vm1, %v57_v8  ;;  %v1151_v8 = vpack.c.bf16 %v307_v7, %v306_v6  ;;  %v1157_v14 = vpack.c.bf16 %v311_v13, %v310_v12  ;;  %v314_v18 = vld [vmem:[#allocation5 + $0x140] sm:$0xff]  ;;  %v315_v19 = vld [vmem:[#allocation5 + $0x148] sm:$0xff]  ;;  %v316_v21 = vld [vmem:[#allocation5 + $0x150] sm:$0xff] }
  0x43   :  { %1012 = vmatprep.mubr.msk.f32.mxu0 %vm1371_vm0, %v1372_v1  ;;  %v317_v22 = vld [vmem:[#allocation5 + $0x158] sm:$0xff]  ;;  %v318_v24 = vld [vmem:[#allocation5 + $0x160] sm:$0xff]  ;;  %v319_v25 = vld [vmem:[#allocation5 + $0x168] sm:$0xff] }
  0x44   :  { %1134 = vmatpush3.bf16.msra.mxu1 %v1133_v17  ;;  %1152 = vmatpush3.bf16.msra.mxu0 %v1151_v8  ;;  %v1160_v17 = vpack.c.bf16 %v313_v16, %v312_v15  ;;  %v320_v27 = vld [vmem:[#allocation5 + $0x170] sm:$0xff]  ;;  %v321_v28 = vld [vmem:[#allocation5 + $0x178] sm:$0xff]  ;;  %v287_v54 = vld [vmem:[#allocation7 + $0x1] sm:$0x1] }
  0x45   :  { %1135 = vmatprep.subr.bf16.mxu1 %v1370_v0  ;;  %1153 = vmatprep.subr.bf16.mxu0 %v1370_v0  ;;  %v439_v7 = vld [vmem:[#allocation5 + $0x1a0] sm:$0xff]  ;;  %v440_v8 = vld [vmem:[#allocation5 + $0x1a8] sm:$0xff]  ;;  %v441_v10 = vld [vmem:[#allocation5 + $0x1b0] sm:$0xff] }
  0x46   :  { %v1181_v9 = vpack.c.bf16 %v440_v8, %v439_v7  ;;  %v443_v13 = vld [vmem:[#allocation5 + $0x1c0] sm:$0xff]  ;;  %v445_v16 = vld [vmem:[#allocation5 + $0x1d0] sm:$0xff]  ;;  %v573_v8 = vld [vmem:[#allocation5 + $0x248] sm:$0xff] }
  0x47   :  { %v572_v7 = vld [vmem:[#allocation5 + $0x240] sm:$0xff] }
  0x48   :  { %1137 = vmatpush3.bf16.msra.mxu1 %v1136_v20  ;;  %1155 = vmatpush3.bf16.msra.mxu0 %v1154_v11  ;;  %v1163_v20 = vpack.c.bf16 %v315_v19, %v314_v18  ;;  %v442_v11 = vld [vmem:[#allocation5 + $0x1b8] sm:$0xff]  ;;  %v447_v19 = vld [vmem:[#allocation5 + $0x1e0] sm:$0xff] }
  0x49   :  { %1138 = vmatprep.subr.bf16.mxu1 %v1370_v0  ;;  %1156 = vmatprep.subr.bf16.mxu0 %v1370_v0  ;;  %v1184_v12 = vpack.c.bf16 %v442_v11, %v441_v10  ;;  %v574_v10 = vld [vmem:[#allocation5 + $0x250] sm:$0xff]  ;;  %v575_v11 = vld [vmem:[#allocation5 + $0x258] sm:$0xff] }
  0x4c   :  { %1140 = vmatpush3.bf16.msra.mxu1 %v1139_v23  ;;  %1158 = vmatpush3.bf16.msra.mxu0 %v1157_v14  ;;  %v1166_v23 = vpack.c.bf16 %v317_v22, %v316_v21  ;;  %v444_v14 = vld [vmem:[#allocation5 + $0x1c8] sm:$0xff]  ;;  %v449_v22 = vld [vmem:[#allocation5 + $0x1f0] sm:$0xff] }
  0x4d   :  { %1141 = vmatprep.subr.bf16.mxu1 %v1370_v0  ;;  %1159 = vmatprep.subr.bf16.mxu0 %v1370_v0  ;;  %v1187_v15 = vpack.c.bf16 %v444_v14, %v443_v13  ;;  %v576_v13 = vld [vmem:[#allocation5 + $0x260] sm:$0xff]  ;;  %v577_v14 = vld [vmem:[#allocation5 + $0x268] sm:$0xff] }
  0x50   :  { %1143 = vmatpush3.bf16.msra.mxu1 %v1142_v26  ;;  %1161 = vmatpush3.bf16.msra.mxu0 %v1160_v17  ;;  %v1169_v26 = vpack.c.bf16 %v319_v25, %v318_v24  ;;  %v446_v17 = vld [vmem:[#allocation5 + $0x1d8] sm:$0xff] }
  0x51   :  { %1144 = vmatprep.subr.bf16.mxu1 %v1370_v0  ;;  %1162 = vmatprep.subr.bf16.mxu0 %v1370_v0  ;;  %v1190_v18 = vpack.c.bf16 %v446_v17, %v445_v16  ;;  %v578_v16 = vld [vmem:[#allocation5 + $0x270] sm:$0xff]  ;;  %v579_v17 = vld [vmem:[#allocation5 + $0x278] sm:$0xff] }
  0x54   :  { %1146 = vmatpush3.bf16.msra.mxu1 %v1145_v29  ;;  %1164 = vmatpush3.bf16.msra.mxu0 %v1163_v20  ;;  %v1172_v29 = vpack.c.bf16 %v321_v28, %v320_v27  ;;  %v448_v20 = vld [vmem:[#allocation5 + $0x1e8] sm:$0xff] }
  0x55   :  { %1147 = vmatprep.subr.bf16.mxu1 %v1370_v0  ;;  %1165 = vmatprep.subr.bf16.mxu0 %v1370_v0  ;;  %v1193_v21 = vpack.c.bf16 %v448_v20, %v447_v19 }
  0x58   :  { %1149 = vmatpush3.bf16.msra.mxu1 %v1148_v32  ;;  %1167 = vmatpush3.bf16.msra.mxu0 %v1166_v23  ;;  %v450_v23 = vld [vmem:[#allocation5 + $0x1f8] sm:$0xff] }
  0x59   :  { %1174 = vmatprep.subr.bf16.mxu1 %v1370_v0  ;;  %1168 = vmatprep.subr.bf16.mxu0 %v1370_v0  ;;  %v1196_v24 = vpack.c.bf16 %v450_v23, %v449_v22 }
  0x5c   :  { %1170 = vmatpush3.bf16.msra.mxu0 %v1169_v26 }
  0x5d   :  { %1171 = vmatprep.subr.bf16.mxu0 %v1370_v0 }
  0x60   :  { %1173 = vmatpush3.bf16.msra.mxu0 %v1172_v29 }
  0x61   :  { %1198 = vmatprep.subr.bf16.mxu0 %v1370_v0 }
 0x115   :  { %v132_v33 = vpop.f32.mrb[0].mxu0 }
 0x116   :  { %v136_v34 = vrot.slane %v132_v33, 4  ;;  %v142_v35 = vmul.f32 %v132_v33, %v132_v33  ;;  %v944_v36 = vpop.f32.mrb[1].mxu0 }
 0x118   :  { %v137_v37 = vadd.f32 %v136_v34, %v132_v33  ;;  %v143_v38 = vrot.slane %v142_v35, 4 }
 0x11a   :  { %v138_v39 = vrot.slane %v137_v37, 2  ;;  %v144_v40 = vadd.f32 %v143_v38, %v142_v35 }
 0x11c   :  { %v139_v41 = vadd.f32 %v138_v39, %v137_v37  ;;  %v145_v42 = vrot.slane %v144_v40, 2 }
 0x11e   :  { %v140_v43 = vrot.slane %v139_v41, 1  ;;  %v146_v44 = vadd.f32 %v145_v42, %v144_v40 }
 0x120   :  { %v141_v45 = vadd.f32 %v140_v43, %v139_v41  ;;  %v147_v46 = vrot.slane %v146_v44, 1 }
 0x122   :  { %v148_v47 = vadd.f32 %v147_v46, %v146_v44  ;;  %v149_v48 = vmul.f32 0.125, %v141_v45 }
 0x124   :  { %v150_v49 = vmul.f32 0.125, %v148_v47  ;;  %v151_v50 = vmul.f32 %v149_v48, %v149_v48 }
 0x126   :  { %v152_v51 = vsub.f32 %v150_v49, %v151_v50 }
 0x128   :  { %v153_v52 = vmax.f32 %v152_v51, 0.0  ;;  %v839_v51 = vld [vmem:[%s1537_s2 + $0x1] sm:$0x1] }
 0x12a   :  { %v155_v53 = vadd.f32 1e-05, %v153_v52 }
 0x12c   :  { %1257 = vrsqrt.f32 %v155_v53 }
 0x136   :  { %v1258_v58 = vpop.eup %1257 }
 0x137   :  { %v157_v59 = vmul.f32 %v1258_v58, %v154_v56 }
 0x139   :  { %v165_v61 = vrot.slane %v157_v59, %v1457_v57  ;;  %v159_v62 = vmul.f32 %v157_v59, %v149_v48 }
 0x13b   :  { %v160_v63 = vsub.f32 %v158_v60, %v159_v62  ;;  %v167_v2 = vmul.f32 %v165_v61, %v132_v33 }
 0x13d   :  { %v172_v3 = vrot.slane %v160_v63, %v1457_v57  ;;  %v435_v63 = vld [vmem:[#allocation5 + $0x180] sm:$0xff] }
 0x13f   :  { %v174_v4 = vadd.f32 %v172_v3, %v167_v2  ;;  %v436_v2 = vld [vmem:[#allocation5 + $0x188] sm:$0xff] }
 0x140   :  { %v1175_v3 = vpack.c.bf16 %v436_v2, %v435_v63  ;;  %v568_v2 = vld [vmem:[#allocation5 + $0x220] sm:$0xff] }
 0x141   :  { %v175_v5 = vmax.f32 %v174_v4, 0.0  ;;  %v437_v4 = vld [vmem:[#allocation5 + $0x190] sm:$0xff] }
 0x143   :  { %978 = vmatmul.mubr.f32.vlgmr.msra.gmra.mrb[0].mxu1 %v175_v5  ;;  %v438_v5 = vld [vmem:[#allocation5 + $0x198] sm:$0xff] }
 0x144   :  { %1047 = vmatprep.mubr.msk.f32.mxu1 %vm1371_vm0, %v1372_v1  ;;  %1176 = vmatpush3.bf16.msra.mxu1 %v1175_v3  ;;  %v1178_v6 = vpack.c.bf16 %v438_v5, %v437_v4  ;;  %v569_v3 = vld [vmem:[#allocation5 + $0x228] sm:$0xff]  ;;  %v570_v5 = vld [vmem:[#allocation5 + $0x230] sm:$0xff] }
 0x145   :  { %1177 = vmatprep.subr.bf16.mxu1 %v1370_v0  ;;  %v1205_v4 = vpack.c.bf16 %v569_v3, %v568_v2  ;;  %v701_v2 = vld [vmem:[#allocation5 + $0x2c0] sm:$0xff]  ;;  %v702_v3 = vld [vmem:[#allocation5 + $0x2c8] sm:$0xff] }
 0x148   :  { %1179 = vmatpush3.bf16.msra.mxu1 %v1178_v6 }
 0x149   :  { %1180 = vmatprep.subr.bf16.mxu1 %v1370_v0 }
 0x14c   :  { %1182 = vmatpush3.bf16.msra.mxu1 %v1181_v9  ;;  %v1211_v9 = vpack.c.bf16 %v573_v8, %v572_v7  ;;  %v705_v7 = vld [vmem:[#allocation5 + $0x2e0] sm:$0xff]  ;;  %v706_v8 = vld [vmem:[#allocation5 + $0x2e8] sm:$0xff] }
 0x14d   :  { %1183 = vmatprep.subr.bf16.mxu1 %v1370_v0 }
 0x150   :  { %1185 = vmatpush3.bf16.msra.mxu1 %v1184_v12  ;;  %v1214_v12 = vpack.c.bf16 %v575_v11, %v574_v10  ;;  %v707_v10 = vld [vmem:[#allocation5 + $0x2f0] sm:$0xff]  ;;  %v708_v11 = vld [vmem:[#allocation5 + $0x2f8] sm:$0xff] }
 0x151   :  { %1186 = vmatprep.subr.bf16.mxu1 %v1370_v0 }
 0x154   :  { %1188 = vmatpush3.bf16.msra.mxu1 %v1187_v15  ;;  %v1217_v15 = vpack.c.bf16 %v577_v14, %v576_v13 }
 0x155   :  { %1189 = vmatprep.subr.bf16.mxu1 %v1370_v0 }
 0x158   :  { %1191 = vmatpush3.bf16.msra.mxu1 %v1190_v18  ;;  %v1220_v18 = vpack.c.bf16 %v579_v17, %v578_v16 }
 0x159   :  { %1192 = vmatprep.subr.bf16.mxu1 %v1370_v0 }
 0x15c   :  { %1194 = vmatpush3.bf16.msra.mxu1 %v1193_v21 }
 0x15d   :  { %1195 = vmatprep.subr.bf16.mxu1 %v1370_v0 }
 0x160   :  { %1197 = vmatpush3.bf16.msra.mxu1 %v1196_v24 }
 0x161   :  { %1222 = vmatprep.subr.bf16.mxu1 %v1370_v0 }
 0x216   :  { %v259_v30 = vpop.f32.mrb[0].mxu1 }
 0x217   :  { %v263_v31 = vrot.slane %v259_v30, 4  ;;  %v269_v32 = vmul.f32 %v259_v30, %v259_v30  ;;  %v979_v33 = vpop.f32.mrb[1].mxu1 }
 0x219   :  { %v264_v34 = vadd.f32 %v263_v31, %v259_v30  ;;  %v270_v35 = vrot.slane %v269_v32, 4 }
 0x21b   :  { %v265_v36 = vrot.slane %v264_v34, 2  ;;  %v271_v37 = vadd.f32 %v270_v35, %v269_v32 }
 0x21d   :  { %v266_v38 = vadd.f32 %v265_v36, %v264_v34  ;;  %v272_v39 = vrot.slane %v271_v37, 2 }
 0x21f   :  { %v267_v40 = vrot.slane %v266_v38, 1  ;;  %v273_v41 = vadd.f32 %v272_v39, %v271_v37 }
 0x221   :  { %v268_v42 = vadd.f32 %v267_v40, %v266_v38  ;;  %v274_v43 = vrot.slane %v273_v41, 1 }
 0x223   :  { %v275_v44 = vadd.f32 %v274_v43, %v273_v41  ;;  %v276_v45 = vmul.f32 0.125, %v268_v42 }
 0x225   :  { %v277_v46 = vmul.f32 0.125, %v275_v44  ;;  %v278_v47 = vmul.f32 %v276_v45, %v276_v45 }
 0x227   :  { %v279_v48 = vsub.f32 %v277_v46, %v278_v47  ;;  %v840_v46 = vld [vmem:[%s1537_s2 + $0x2] sm:$0x1] }
 0x229   :  { %v280_v49 = vmax.f32 %v279_v48, 0.0 }
 0x22b   :  { %v283_v50 = vadd.f32 1e-05, %v280_v49  ;;  %v416_v49 = vld [vmem:[#allocation7 + $0x2] sm:$0x1] }
 0x22d   :  { %1259 = vrsqrt.f32 %v283_v50 }
 0x237   :  { %v1260_v52 = vpop.eup %1259 }
 0x238   :  { %v285_v53 = vmul.f32 %v1260_v52, %v839_v51 }
 0x23a   :  { %v288_v55 = vmul.f32 %v285_v53, %v276_v45  ;;  %v294_v56 = vrot.slane %v285_v53, %v1457_v57 }
 0x23c   :  { %v289_v58 = vsub.f32 %v287_v54, %v288_v55  ;;  %v296_v59 = vmul.f32 %v294_v56, %v259_v30 }
 0x23e   :  { %v301_v60 = vrot.slane %v289_v58, %v1457_v57  ;;  %v564_v58 = vld [vmem:[#allocation5 + $0x200] sm:$0xff] }
 0x240   :  { %v303_v61 = vadd.f32 %v301_v60, %v296_v59  ;;  %v565_v59 = vld [vmem:[#allocation5 + $0x208] sm:$0xff] }
 0x241   :  { %v1199_v60 = vpack.c.bf16 %v565_v59, %v564_v58  ;;  %v697_v58 = vld [vmem:[#allocation5 + $0x2a0] sm:$0xff]  ;;  %v698_v59 = vld [vmem:[#allocation5 + $0x2a8] sm:$0xff] }
 0x242   :  { %v304_v62 = vmax.f32 %v303_v61, 0.0  ;;  %v566_v61 = vld [vmem:[#allocation5 + $0x210] sm:$0xff] }
 0x244   :  { %1013 = vmatmul.mubr.f32.vlgmr.msra.gmra.mrb[2].mxu0 %v304_v62  ;;  %v567_v62 = vld [vmem:[#allocation5 + $0x218] sm:$0xff] }
 0x245   :  { %1082 = vmatprep.mubr.msk.f32.mxu0 %vm1371_vm0, %v1372_v1  ;;  %1200 = vmatpush3.bf16.msra.mxu0 %v1199_v60  ;;  %v1202_v63 = vpack.c.bf16 %v567_v62, %v566_v61  ;;  %v1229_v60 = vpack.c.bf16 %v698_v59, %v697_v58  ;;  %v699_v61 = vld [vmem:[#allocation5 + $0x2b0] sm:$0xff]  ;;  %v700_v62 = vld [vmem:[#allocation5 + $0x2b8] sm:$0xff] }
 0x246   :  { %1201 = vmatprep.subr.bf16.mxu0 %v1370_v0 }
 0x249   :  { %1203 = vmatpush3.bf16.msra.mxu0 %v1202_v63  ;;  %v1232_v63 = vpack.c.bf16 %v700_v62, %v699_v61 }
 0x24a   :  { %1204 = vmatprep.subr.bf16.mxu0 %v1370_v0 }
 0x24d   :  { %1206 = vmatpush3.bf16.msra.mxu0 %v1205_v4  ;;  %v1235_v4 = vpack.c.bf16 %v702_v3, %v701_v2 }
 0x24e   :  { %1207 = vmatprep.subr.bf16.mxu0 %v1370_v0 }
 0x317   :  { %v388_v25 = vpop.f32.mrb[2].mxu0 }
 0x318   :  { %v392_v26 = vrot.slane %v388_v25, 4  ;;  %v398_v27 = vmul.f32 %v388_v25, %v388_v25  ;;  %v1014_v28 = vpop.f32.mrb[3].mxu0 }
 0x31a   :  { %v393_v29 = vadd.f32 %v392_v26, %v388_v25  ;;  %v399_v30 = vrot.slane %v398_v27, 4 }
 0x31c   :  { %v394_v31 = vrot.slane %v393_v29, 2  ;;  %v400_v32 = vadd.f32 %v399_v30, %v398_v27 }
 0x31e   :  { %v395_v33 = vadd.f32 %v394_v31, %v393_v29  ;;  %v401_v34 = vrot.slane %v400_v32, 2 }
 0x320   :  { %v396_v35 = vrot.slane %v395_v33, 1  ;;  %v402_v36 = vadd.f32 %v401_v34, %v400_v32 }
 0x322   :  { %v397_v37 = vadd.f32 %v396_v35, %v395_v33  ;;  %v403_v38 = vrot.slane %v402_v36, 1 }
 0x324   :  { %v404_v39 = vadd.f32 %v403_v38, %v402_v36  ;;  %v405_v40 = vmul.f32 0.125, %v397_v37 }
 0x326   :  { %v406_v41 = vmul.f32 0.125, %v404_v39  ;;  %v407_v42 = vmul.f32 %v405_v40, %v405_v40 }
 0x328   :  { %v408_v43 = vsub.f32 %v406_v41, %v407_v42 }
 0x32a   :  { %v409_v44 = vmax.f32 %v408_v43, 0.0  ;;  %v545_v43 = vld [vmem:[#allocation7 + $0x3] sm:$0x1] }
 0x32c   :  { %v412_v45 = vadd.f32 1e-05, %v409_v44 }
 0x32e   :  { %1261 = vrsqrt.f32 %v412_v45 }
 0x338   :  { %v1262_v47 = vpop.eup %1261 }
 0x339   :  { %v414_v48 = vmul.f32 %v1262_v47, %v840_v46 }
 0x33b   :  { %v417_v50 = vmul.f32 %v414_v48, %v405_v40  ;;  %v423_v51 = vrot.slane %v414_v48, %v1457_v57  ;;  %v841_v40 = vld [vmem:[%s1537_s2 + $0x3] sm:$0x1] }
 0x33d   :  { %v418_v52 = vsub.f32 %v416_v49, %v417_v50  ;;  %v425_v53 = vmul.f32 %v423_v51, %v388_v25  ;;  %v693_v51 = vld [vmem:[#allocation5 + $0x280] sm:$0xff] }
 0x33f   :  { %v430_v54 = vrot.slane %v418_v52, %v1457_v57  ;;  %v694_v52 = vld [vmem:[#allocation5 + $0x288] sm:$0xff] }
 0x341   :  { %v432_v55 = vadd.f32 %v430_v54, %v425_v53  ;;  %v1223_v53 = vpack.c.bf16 %v694_v52, %v693_v51  ;;  %v695_v54 = vld [vmem:[#allocation5 + $0x290] sm:$0xff] }
 0x343   :  { %v433_v56 = vmax.f32 %v432_v55, 0.0  ;;  %v696_v55 = vld [vmem:[#allocation5 + $0x298] sm:$0xff] }
 0x345   :  { %1048 = vmatmul.mubr.f32.vlgmr.msra.gmra.mrb[2].mxu1 %v433_v56  ;;  %v1226_v56 = vpack.c.bf16 %v696_v55, %v695_v54 }
 0x346   :  { %1117 = vmatprep.mubr.msk.f32.mxu1 %vm1371_vm0, %v1372_v1  ;;  %v571_v1 = vld [vmem:[#allocation5 + $0x238] sm:$0xff]  ;;  %1224 = vmatpush3.bf16.msra.mxu1 %v1223_v53 }
 0x347   :  { %v1208_v6 = vpack.c.bf16 %v571_v1, %v570_v5  ;;  %1225 = vmatprep.subr.bf16.mxu1 %v1370_v0  ;;  %v703_v5 = vld [vmem:[#allocation5 + $0x2d0] sm:$0xff]  ;;  %v704_v1 = vld [vmem:[#allocation5 + $0x2d8] sm:$0xff] }
 0x349   :  { %1209 = vmatpush3.bf16.msra.mxu0 %v1208_v6  ;;  %v1238_v6 = vpack.c.bf16 %v704_v1, %v703_v5 }
 0x34a   :  { %1210 = vmatprep.subr.bf16.mxu0 %v1370_v0  ;;  %1227 = vmatpush3.bf16.msra.mxu1 %v1226_v56 }
 0x34b   :  { %1228 = vmatprep.subr.bf16.mxu1 %v1370_v0 }
 0x34d   :  { %1212 = vmatpush3.bf16.msra.mxu0 %v1211_v9  ;;  %v1241_v9 = vpack.c.bf16 %v706_v8, %v705_v7 }
 0x34e   :  { %1213 = vmatprep.subr.bf16.mxu0 %v1370_v0  ;;  %1230 = vmatpush3.bf16.msra.mxu1 %v1229_v60 }
 0x34f   :  { %1231 = vmatprep.subr.bf16.mxu1 %v1370_v0 }
 0x351   :  { %1215 = vmatpush3.bf16.msra.mxu0 %v1214_v12  ;;  %v1244_v12 = vpack.c.bf16 %v708_v11, %v707_v10 }
 0x352   :  { %1216 = vmatprep.subr.bf16.mxu0 %v1370_v0  ;;  %1233 = vmatpush3.bf16.msra.mxu1 %v1232_v63 }
 0x353   :  { %1234 = vmatprep.subr.bf16.mxu1 %v1370_v0 }
 0x355   :  { %1218 = vmatpush3.bf16.msra.mxu0 %v1217_v15 }
 0x356   :  { %1219 = vmatprep.subr.bf16.mxu0 %v1370_v0  ;;  %1236 = vmatpush3.bf16.msra.mxu1 %v1235_v4  ;;  %v843_v4 = vld [vmem:[%s1537_s2 + $0x5] sm:$0x1] }
 0x357   :  { %1237 = vmatprep.subr.bf16.mxu1 %v1370_v0 }
 0x359   :  { %1221 = vmatpush3.bf16.msra.mxu0 %v1220_v18 }
 0x35a   :  { %1239 = vmatpush3.bf16.msra.mxu1 %v1238_v6  ;;  %v803_v6 = vld [vmem:[#allocation7 + $0x5] sm:$0x1] }
 0x35b   :  { %1240 = vmatprep.subr.bf16.mxu1 %v1370_v0 }
 0x35e   :  { %1242 = vmatpush3.bf16.msra.mxu1 %v1241_v9 }
 0x35f   :  { %1243 = vmatprep.subr.bf16.mxu1 %v1370_v0 }
 0x362   :  { %1245 = vmatpush3.bf16.msra.mxu1 %v1244_v12 }
 0x418   :  { %v517_v19 = vpop.f32.mrb[2].mxu1 }
 0x419   :  { %v521_v20 = vrot.slane %v517_v19, 4  ;;  %v527_v21 = vmul.f32 %v517_v19, %v517_v19  ;;  %v1049_v22 = vpop.f32.mrb[3].mxu1 }
 0x41b   :  { %v522_v23 = vadd.f32 %v521_v20, %v517_v19  ;;  %v528_v24 = vrot.slane %v527_v21, 4 }
 0x41d   :  { %v523_v25 = vrot.slane %v522_v23, 2  ;;  %v529_v26 = vadd.f32 %v528_v24, %v527_v21 }
 0x41f   :  { %v524_v27 = vadd.f32 %v523_v25, %v522_v23  ;;  %v530_v28 = vrot.slane %v529_v26, 2 }
 0x421   :  { %v525_v29 = vrot.slane %v524_v27, 1  ;;  %v531_v30 = vadd.f32 %v530_v28, %v529_v26 }
 0x423   :  { %v526_v31 = vadd.f32 %v525_v29, %v524_v27  ;;  %v532_v32 = vrot.slane %v531_v30, 1 }
 0x425   :  { %v533_v33 = vadd.f32 %v532_v32, %v531_v30  ;;  %v534_v34 = vmul.f32 0.125, %v526_v31 }
 0x427   :  { %v535_v35 = vmul.f32 0.125, %v533_v33  ;;  %v536_v36 = vmul.f32 %v534_v34, %v534_v34  ;;  %v842_v33 = vld [vmem:[%s1537_s2 + $0x4] sm:$0x1] }
 0x429   :  { %v537_v37 = vsub.f32 %v535_v35, %v536_v36  ;;  %v674_v36 = vld [vmem:[#allocation7 + $0x4] sm:$0x1] }
 0x42b   :  { %v538_v38 = vmax.f32 %v537_v37, 0.0 }
 0x42d   :  { %v541_v39 = vadd.f32 1e-05, %v538_v38 }
 0x42f   :  { %1263 = vrsqrt.f32 %v541_v39 }
 0x439   :  { %v1264_v41 = vpop.eup %1263 }
 0x43a   :  { %v543_v42 = vmul.f32 %v1264_v41, %v841_v40 }
 0x43c   :  { %v546_v44 = vmul.f32 %v543_v42, %v534_v34  ;;  %v552_v45 = vrot.slane %v543_v42, %v1457_v57 }
 0x43e   :  { %v547_v46 = vsub.f32 %v545_v43, %v546_v44  ;;  %v554_v47 = vmul.f32 %v552_v45, %v517_v19 }
 0x440   :  { %v559_v48 = vrot.slane %v547_v46, %v1457_v57 }
 0x442   :  { %v561_v49 = vadd.f32 %v559_v48, %v554_v47 }
 0x444   :  { %v562_v50 = vmax.f32 %v561_v49, 0.0 }
 0x446   :  { %1083 = vmatmul.mubr.f32.vlgmr.msra.gmra.mrb[4].mxu0 %v562_v50 }
 0x519   :  { %v646_v13 = vpop.f32.mrb[4].mxu0 }
 0x51a   :  { %v650_v14 = vrot.slane %v646_v13, 4  ;;  %v656_v15 = vmul.f32 %v646_v13, %v646_v13  ;;  %v1084_v16 = vpop.f32.mrb[5].mxu0 }
 0x51c   :  { %v651_v17 = vadd.f32 %v650_v14, %v646_v13  ;;  %v657_v18 = vrot.slane %v656_v15, 4 }
 0x51e   :  { %v652_v19 = vrot.slane %v651_v17, 2  ;;  %v658_v20 = vadd.f32 %v657_v18, %v656_v15 }
 0x520   :  { %v653_v21 = vadd.f32 %v652_v19, %v651_v17  ;;  %v659_v22 = vrot.slane %v658_v20, 2 }
 0x522   :  { %v654_v23 = vrot.slane %v653_v21, 1  ;;  %v660_v24 = vadd.f32 %v659_v22, %v658_v20 }
 0x524   :  { %v655_v25 = vadd.f32 %v654_v23, %v653_v21  ;;  %v661_v26 = vrot.slane %v660_v24, 1 }
 0x526   :  { %v662_v27 = vadd.f32 %v661_v26, %v660_v24  ;;  %v663_v0 = vmul.f32 0.125, %v655_v25 }
 0x528   :  { %v664_v28 = vmul.f32 0.125, %v662_v27  ;;  %v665_v29 = vmul.f32 %v663_v0, %v663_v0 }
 0x52a   :  { %v666_v30 = vsub.f32 %v664_v28, %v665_v29 }
 0x52c   :  { %v667_v31 = vmax.f32 %v666_v30, 0.0 }
 0x52e   :  { %v670_v32 = vadd.f32 1e-05, %v667_v31 }
 0x530   :  { %1265 = vrsqrt.f32 %v670_v32 }
 0x53a   :  { %v1266_v34 = vpop.eup %1265 }
 0x53b   :  { %v672_v35 = vmul.f32 %v1266_v34, %v842_v33 }
 0x53d   :  { %v675_v37 = vmul.f32 %v672_v35, %v663_v0  ;;  %v681_v38 = vrot.slane %v672_v35, %v1457_v57 }
 0x53f   :  { %v676_v39 = vsub.f32 %v674_v36, %v675_v37  ;;  %v683_v40 = vmul.f32 %v681_v38, %v646_v13 }
 0x541   :  { %v688_v41 = vrot.slane %v676_v39, %v1457_v57 }
 0x543   :  { %v690_v42 = vadd.f32 %v688_v41, %v683_v40 }
 0x545   :  { %v691_v43 = vmax.f32 %v690_v42, 0.0 }
 0x547   :  { %1118 = vmatmul.mubr.f32.vlgmr.msra.gmra.mrb[4].mxu1 %v691_v43 }
 0x61a   :  { %v775_v44 = vpop.f32.mrb[4].mxu1 }
 0x61b   :  { %v779_v45 = vrot.slane %v775_v44, 4  ;;  %v785_v46 = vmul.f32 %v775_v44, %v775_v44  ;;  %v1119_v47 = vpop.f32.mrb[5].mxu1 }
 0x61d   :  { %v780_v48 = vadd.f32 %v779_v45, %v775_v44  ;;  %v786_v49 = vrot.slane %v785_v46, 4 }
 0x61f   :  { %v781_v50 = vrot.slane %v780_v48, 2  ;;  %v787_v51 = vadd.f32 %v786_v49, %v785_v46 }
 0x621   :  { %v782_v52 = vadd.f32 %v781_v50, %v780_v48  ;;  %v788_v53 = vrot.slane %v787_v51, 2 }
 0x623   :  { %v783_v54 = vrot.slane %v782_v52, 1  ;;  %v789_v55 = vadd.f32 %v788_v53, %v787_v51 }
 0x625   :  { %v784_v56 = vadd.f32 %v783_v54, %v782_v52  ;;  %v790_v58 = vrot.slane %v789_v55, 1 }
 0x627   :  { %v791_v59 = vadd.f32 %v790_v58, %v789_v55  ;;  %v792_v60 = vmul.f32 0.125, %v784_v56 }
 0x629   :  { %v793_v61 = vmul.f32 0.125, %v791_v59  ;;  %v794_v62 = vmul.f32 %v792_v60, %v792_v60 }
 0x62b   :  { %v795_v63 = vsub.f32 %v793_v61, %v794_v62 }
 0x62d   :  { %v796_v2 = vmax.f32 %v795_v63, 0.0 }
 0x62f   :  { %v799_v3 = vadd.f32 1e-05, %v796_v2 }
 0x631   :  { %1267 = vrsqrt.f32 %v799_v3 }
 0x63b   :  { %v1268_v5 = vpop.eup %1267 }
 0x63c   :  { %v801_v1 = vmul.f32 %v1268_v5, %v843_v4 }
 0x63e   :  { %v804_v7 = vmul.f32 %v801_v1, %v792_v60  ;;  %v810_v8 = vrot.slane %v801_v1, %v1457_v57 }
 0x640   :  { %v805_v9 = vsub.f32 %v803_v6, %v804_v7  ;;  %v812_v10 = vmul.f32 %v810_v8, %v775_v44 }
 0x642   :  { %v817_v11 = vrot.slane %v805_v9, %v1457_v57 }
 0x644   :  { %v819_v12 = vadd.f32 %v817_v11, %v812_v10 }
 0x646   :  { %v820_v13 = vmax.f32 %v819_v12, 0.0 }
 0x648   :  { %821 = vst.msk [vmem:[#allocation8] sm:$0xff] %vm62_vm1, %v820_v13 }
 0x649   :  { %1346 = shalt.err (!%p1343_p0)
}
 0x64a   :  { %s1347_s15 = scalar_lea.hbm %s1539_s4, 128 }
 0x64b   :  { %p1348_p1 = scmp.ne.s32.totalorder %s1539_s4, %s1347_s15  ;;  %p1351_p2 = scmp.lt.u32.totalorder %s1347_s15, %s1539_s4 }
 0x64d   :  { %p1353_p3 = pnand %p1351_p2, %p1348_p1 }
 0x64f   :  { %1356 = shalt.err (!%p1353_p3)
}
 0x650   :  { %831 = dma.vmem_to_hbm [thread:$0]  %s829_s13, 128, %s1539_s4, [#allocation4]  }
 0x651   :  { %1361 = dma.done.wait [#allocation4], 128  }
 0x652   :  { %1362 = vsyncadd [#allocation4], 4294967168 }
 0x653   :  { %835 = vsyncpa [#allocation3], 1 }
 0x654   :  { %836 = vsyncpa [#allocation6], 1 }
 0x655   :  { %837 = vsyncpa [#allocation4], 1 }

</bundles_post_ra>
